<compile_context>
chip_gen: v7x
topology: tpu7x:2x2x1
jax: 0.10.0
libtpu: 0.0.40
codegen_flags: <defaults>
</compile_context>

<pallas_src>
import numpy as np
import jax
import jax.numpy as jnp
from jax.experimental import pallas as pl
from jax.experimental.pallas import tpu as pltpu

LANE = 128  # TPU lane width


def _round_up(n, m):
    return ((n + m - 1) // m) * m


# ----------------------------------------------------------------------------
# Deterministic Gabor filter bank construction (plain numpy, matches the
# classicalv1 GaborFilter semantics: rotated Gaussian envelope * cosine grating).
# ----------------------------------------------------------------------------
def gabor_filter(pos, sigma_x, sigma_y, sf, phase, theta, res, xlim, ylim):
    xs = np.linspace(xlim[0], xlim[1], res[0])
    ys = np.linspace(ylim[0], ylim[1], res[1])
    X, Y = np.meshgrid(xs, ys, indexing="ij")
    Xc = X - pos[0]
    Yc = Y - pos[1]
    Xr = Xc * np.cos(theta) + Yc * np.sin(theta)
    Yr = -Xc * np.sin(theta) + Yc * np.cos(theta)
    envelope = np.exp(-(Xr ** 2 / (2.0 * sigma_x ** 2) + Yr ** 2 / (2.0 * sigma_y ** 2)))
    carrier = np.cos(2.0 * np.pi * sf * Xr + phase)
    return (envelope * carrier).astype(np.float32)


def make_filter_banks(pos=(0.0, 0.0), sigma_x=0.3, sigma_y=0.3, sf=1.0,
                      n_thetas=18, res=(30, 30), xlim=(-1.0, 1.0),
                      ylim=(-1.0, 1.0), max_angle=2.0 * np.pi):
    """Returns numpy f1, f2 of shape (N, 1, H, W), matching the torch buffers."""
    thetas = np.linspace(0.0, max_angle, n_thetas + 1)[:-1]
    f1 = np.stack([gabor_filter(pos, sigma_x, sigma_y, sf, 0.0, t, res, xlim, ylim)
                   for t in thetas])[:, None, :, :]
    f2 = np.stack([gabor_filter(pos, sigma_x, sigma_y, sf, np.pi / 2.0, t, res, xlim, ylim)
                   for t in thetas])[:, None, :, :]
    return f1, f2


def build_fused_filter_matrix(f1, f2):
    """Pack both banks into one (K_pad, 2*LANE) f32 RHS, entirely in numpy.

    f1 occupies lanes [0, N), f2 occupies lanes [LANE, LANE+N); all other
    entries (including the K padding rows) are zero, so they contribute 0 to
    the dot products and 0 <= max over the real magnitudes-squared.
    """
    N = f1.shape[0]
    assert N <= LANE, "n_thetas must be <= 128 for this packing"
    K = int(np.prod(f1.shape[1:]))
    K_pad = _round_up(K, LANE)
    F = np.zeros((K_pad, 2 * LANE), dtype=np.float32)
    F[:K, 0:N] = f1.reshape(N, K).T
    F[:K, LANE:LANE + N] = f2.reshape(N, K).T
    return jnp.asarray(F)


# ----------------------------------------------------------------------------
# Pallas kernel: one fused matmul, squared magnitude, max-reduce, single sqrt.
# ----------------------------------------------------------------------------
def rot_inv_kernel(x_ref, f_ref, out_ref):
    x = x_ref[...]                                               # (TB, K_pad)
    f = f_ref[...]                                               # (K_pad, 2*LANE)
    y = jnp.dot(x, f, preferred_element_type=jnp.float32)        # (TB, 2*LANE)
    x1 = y[:, :LANE]                                             # lane-aligned slice
    x2 = y[:, LANE:]                                             # lane-aligned slice
    r2 = x1 * x1 + x2 * x2                                       # (TB, LANE); padded lanes are 0
    # max before sqrt (exact: sqrt is monotone on non-negatives) -> one sqrt per row
    out_ref[...] = jnp.sqrt(jnp.max(r2, axis=1, keepdims=True))  # (TB, 1)


def rotation_invariant_complex(x, fused_filters, block_b=256):
    """x: (B, C, H, W) float32; fused_filters: (K_pad, 2*LANE) from
    build_fused_filter_matrix. Returns (B,) max-over-theta complex magnitude."""
    B, C, H, W = x.shape
    K = C * H * W
    K_pad, two_lane = fused_filters.shape

    x_flat = x.reshape(B, K).astype(jnp.float32)
    if K_pad > K:
        x_flat = jnp.pad(x_flat, ((0, 0), (0, K_pad - K)))

    # B tiling: multiple of 8 sublanes, capped at block_b, batch zero-padded.
    TB = _round_up(min(block_b, _round_up(B, 8)), 8)
    B_pad = _round_up(B, TB)
    if B_pad > B:
        x_flat = jnp.pad(x_flat, ((0, B_pad - B), (0, 0)))

    out = pl.pallas_call(
        rot_inv_kernel,
        out_shape=jax.ShapeDtypeStruct((B_pad, 1), jnp.float32),
        grid=(B_pad // TB,),
        in_specs=[
            pl.BlockSpec((TB, K_pad), lambda i: (i, 0)),          # streamed x tiles
            pl.BlockSpec((K_pad, two_lane), lambda i: (0, 0)),    # resident filter block
        ],
        out_specs=pl.BlockSpec((TB, 1), lambda i: (i, 0)),
        compiler_params=pltpu.CompilerParams(
            dimension_semantics=("parallel",)),                   # megacore-friendly
    )(x_flat, fused_filters)
    return out[:B, 0]


# ----------------------------------------------------------------------------
# Pure-JAX reference mirroring the torch forward.
# ----------------------------------------------------------------------------
def reference(x, f1, f2):
    x1 = jnp.einsum("bcxy,ncxy->bn", x, f1)
    x2 = jnp.einsum("bcxy,ncxy->bn", x, f2)
    return jnp.max(jnp.sqrt(x1 ** 2 + x2 ** 2), axis=1)


if __name__ == "__main__":
    res = (30, 30)
    n_thetas = 18
    B, C = 2, 1

    f1_np, f2_np = make_filter_banks(n_thetas=n_thetas, res=res)
    fused = build_fused_filter_matrix(f1_np, f2_np)          # host-side, once
    f1 = jnp.asarray(f1_np)
    f2 = jnp.asarray(f2_np)

    key = jax.random.PRNGKey(0)
    x = jax.random.normal(key, (B, C, res[0], res[1]), dtype=jnp.float32)

    out = jax.block_until_ready(rotation_invariant_complex(x, fused))
    ref = jax.block_until_ready(reference(x, f1, f2))
    assert out.shape == (B,)
    np.testing.assert_allclose(np.asarray(out), np.asarray(ref), rtol=2e-4, atol=2e-4)

    # Second check: exercise the multi-block (tiled, padded) batch path.
    key2 = jax.random.PRNGKey(1)
    x2 = jax.random.normal(key2, (20, C, res[0], res[1]), dtype=jnp.float32)
    out2 = jax.block_until_ready(rotation_invariant_complex(x2, fused, block_b=8))
    ref2 = jax.block_until_ready(reference(x2, f1, f2))
    assert out2.shape == (20,)
    np.testing.assert_allclose(np.asarray(out2), np.asarray(ref2), rtol=2e-4, atol=2e-4)

    print("KERNEL_OK")
</pallas_src>

<mosaic_0001>
module attributes {stable_mosaic.version = 11 : i64} {
  func.func @rot_inv_kernel(%arg0: i32, %arg1: memref<8x1024xf32, #tpu.memory_space<vmem>>, %arg2: memref<1024x256xf32, #tpu.memory_space<vmem>>, %arg3: memref<8x1xf32, #tpu.memory_space<vmem>>) attributes {dimension_semantics = [#tpu.dimension_semantics<parallel>], iteration_bounds = array<i64: 1>, scalar_prefetch = 0 : i64, scratch_operands = 0 : i64, tpu.core_type = #tpu.core_type<tc>, window_params = [{transform_indices = @transform_0, window_bounds = array<i64: 8, 1024>}, {pipeline_mode = #tpu.pipeline_mode<synchronous>, transform_indices = @transform_1, window_bounds = array<i64: 1024, 256>}, {transform_indices = @transform_2, window_bounds = array<i64: 8, 1>}]} {
    %c0 = arith.constant 0 : index
    %c0_0 = arith.constant 0 : index
    %0 = vector.load %arg1[%c0, %c0_0] : memref<8x1024xf32, #tpu.memory_space<vmem>>, vector<8x1024xf32>
    %c0_1 = arith.constant 0 : index
    %c0_2 = arith.constant 0 : index
    %1 = vector.load %arg2[%c0_1, %c0_2] : memref<1024x256xf32, #tpu.memory_space<vmem>>, vector<1024x256xf32>
    %cst = arith.constant dense<0.000000e+00> : vector<8x256xf32>
    %2 = tpu.matmul %0, %1, %cst {dimension_numbers = #tpu.dot_dimension_numbers<[1], [0], [0], [1], [0, 0, 1, 1], [], []>} : vector<8x1024xf32>, vector<1024x256xf32>, vector<8x256xf32> -> vector<8x256xf32>
    %3 = vector.extract_strided_slice %2 {offsets = [0, 0], sizes = [8, 128], strides = [1, 1]} : vector<8x256xf32> to vector<8x128xf32>
    %4 = vector.extract_strided_slice %2 {offsets = [0, 128], sizes = [8, 128], strides = [1, 1]} : vector<8x256xf32> to vector<8x128xf32>
    %5 = arith.mulf %3, %3 : vector<8x128xf32>
    %6 = arith.mulf %4, %4 : vector<8x128xf32>
    %7 = arith.addf %5, %6 : vector<8x128xf32>
    %cst_3 = arith.constant dense<0xFF800000> : vector<8xf32>
    %8 = vector.multi_reduction <maximumf>, %7, %cst_3 [1] : vector<8x128xf32> to vector<8xf32>
    %9 = vector.shape_cast %8 : vector<8xf32> to vector<8x1xf32>
    %10 = math.sqrt %9 : vector<8x1xf32>
    %c0_4 = arith.constant 0 : index
    %c0_5 = arith.constant 0 : index
    %11 = vector.load %arg3[%c0_4, %c0_5] : memref<8x1xf32, #tpu.memory_space<vmem>>, vector<8x1xf32>
    tpu.vector_store %arg3[%c0_4, %c0_5], %10 {strides = array<i32>} : memref<8x1xf32, #tpu.memory_space<vmem>>, vector<8x1xf32>,
    return
  }
  func.func @transform_0(%arg0: i32) -> (i32, i32) {
    %c0_i32 = arith.constant 0 : i32
    %c0_i32_0 = arith.constant 0 : i32
    return %arg0, %c0_i32 : i32, i32
  }
  func.func @transform_1(%arg0: i32) -> (i32, i32) {
    %c0_i32 = arith.constant 0 : i32
    %c0_i32_0 = arith.constant 0 : i32
    %c0_i32_1 = arith.constant 0 : i32
    return %c0_i32, %c0_i32_0 : i32, i32
  }
  func.func @transform_2(%arg0: i32) -> (i32, i32) {
    %c0_i32 = arith.constant 0 : i32
    %c0_i32_0 = arith.constant 0 : i32
    return %arg0, %c0_i32 : i32, i32
  }
}

</mosaic_0001>

<bundles_post_ra>
// kernel: tpu_custom_call.1
= control target key start
LH: loop header
LB: loop body
LE: loop exit
PB: predicated region body
PF: predicated region fallthrough
CT: control target
= control target key end

     0   :  { %7 = vsyncpa [#allocation3], 0  ;;  %s974_s0 = inlined_call_operand.hbm [shape: f32[8,1024], index: 0, kind: input, shape index: {}]   ;;  %s975_s1 = inlined_call_operand.hbm [shape: f32[1024,256], index: 1, kind: input, shape index: {}]   ;;  %s976_s2 = inlined_call_operand.vmem [shape: f32[8,1], index: 2, kind: output, shape index: {}]  }
   0x1   :  { %8 = vsyncpa [#allocation5], 0  ;;  %s921_s9 = smov [#allocation2]   ;;  %s922_s11 = smov [#allocation4]  }
   0x2   :  { %s15_s10 = sshll.u32 %s921_s9, 4  ;;  %s24_s12 = sshll.u32 %s922_s11, 4  ;;  %s16_s10 = int_to_ptr.vmem [resolvable:$true] %s15_s10  ;;  %s940_s12 = int_to_ptr.vmem [resolvable:$true] %s24_s12 }
   0x3   :  { %s873_s15 = scalar_lea.hbm %s974_s0, 1024 }
   0x4   :  { %p874_p0 = scmp.ne.s32.totalorder %s974_s0, %s873_s15  ;;  %p877_p1 = scmp.lt.u32.totalorder %s873_s15, %s974_s0 }
   0x6   :  { %p879_p2 = pnand %p877_p1, %p874_p0 }
   0x8   :  { %882 = shalt.err (!%p879_p2)
}
   0x9   :  { %s883_s20 = scalar_lea.vmem %s16_s10, 1024  ;;  %p888_p4 = scmp.lt.s32.totalorder %s16_s10, %s16_s10 }
   0xa   :  { %p884_p3 = scmp.ne.s32.totalorder %s16_s10, %s883_s20  ;;  %p889_p5 = scmp.lt.s32.totalorder %s883_s20, %s883_s20 }
   0xc   :  { %p890_p6 = por %p889_p5, %p888_p4 }
   0xe   :  { %p891_p7 = pnand %p890_p6, %p884_p3 }
  0x10   :  { %894 = shalt.err (!%p891_p7)
}
  0x11   :  { %18 = dma.hbm_to_vmem [thread:$0]  %s974_s0, 1024, %s16_s10, [#allocation3]  }
  0x12   :  { %s895_s25 = scalar_lea.hbm %s975_s1, 32768 }
  0x13   :  { %p896_p8 = scmp.ne.s32.totalorder %s975_s1, %s895_s25  ;;  %p899_p9 = scmp.lt.u32.totalorder %s895_s25, %s975_s1 }
  0x15   :  { %p901_p10 = pnand %p899_p9, %p896_p8 }
  0x17   :  { %904 = shalt.err (!%p901_p10)
}
  0x18   :  { %s905_s30 = scalar_lea.vmem %s940_s12, 32768  ;;  %p910_p12 = scmp.lt.s32.totalorder %s940_s12, %s940_s12 }
  0x19   :  { %p906_p11 = scmp.ne.s32.totalorder %s940_s12, %s905_s30  ;;  %p911_p13 = scmp.lt.s32.totalorder %s905_s30, %s905_s30 }
  0x1b   :  { %p912_p0 = por %p911_p13, %p910_p12 }
  0x1d   :  { %p913_p1 = pnand %p912_p0, %p906_p11 }
  0x1f   :  { %916 = shalt.err (!%p913_p1)
}
  0x20   :  { %s923_s0 = smov 256   ;;  %s924_s3 = smov 16  }
  0x21   :  { %30 = dma.hbm_to_vmem [thread:$0]  %s975_s1, 32768, %s940_s12, [#allocation5], %s923_s0, %s923_s0, %s924_s3  }
  0x22   :  { %917 = dma.done.wait [#allocation3], 1024  }
  0x23   :  { %918 = vsyncadd [#allocation3], 4294966272 }
  0x24   :  { %919 = dma.done.wait [#allocation5], 32768  }
  0x25   :  { %920 = vsyncadd [#allocation5], 4294934528  ;;  %v46_v0 = vld [vmem:[#allocation4 + $0x8] sm:$0xff]  ;;  %v48_v1 = vld [vmem:[#allocation4 + $0x18] sm:$0xff]  ;;  %vm597_vm1 = vcmask 7168  }
  0x26   :  { %v174_v2 = vld [vmem:[#allocation4 + $0x408] sm:$0xff]  ;;  %v605_v3 = vpack.c.bf16 %v48_v1, %v46_v0  ;;  %v176_v4 = vld [vmem:[#allocation4 + $0x418] sm:$0xff]  ;;  %v45_v5 = vld [vmem:[#allocation4] sm:$0xff] }
  0x27   :  { %v47_v6 = vld [vmem:[#allocation4 + $0x10] sm:$0xff]  ;;  %v733_v7 = vpack.c.bf16 %v176_v4, %v174_v2  ;;  %v173_v9 = vld [vmem:[#allocation4 + $0x400] sm:$0xff]  ;;  %v50_v11 = vld [vmem:[#allocation4 + $0x28] sm:$0xff] }
  0x28   :  { %v607_v8 = vpack.c.bf16 %v47_v6, %v45_v5  ;;  %v175_v10 = vld [vmem:[#allocation4 + $0x410] sm:$0xff]  ;;  %606 = vmatprep.subr.bf16.mxu1 %v605_v3  ;;  %v52_v13 = vld [vmem:[#allocation4 + $0x38] sm:$0xff]  ;;  %v178_v14 = vld [vmem:[#allocation4 + $0x428] sm:$0xff] }
  0x29   :  { %v735_v12 = vpack.c.bf16 %v175_v10, %v173_v9  ;;  %v180_v15 = vld [vmem:[#allocation4 + $0x438] sm:$0xff]  ;;  %734 = vmatprep.subr.bf16.mxu0 %v733_v7  ;;  %v609_v16 = vpack.c.bf16 %v52_v13, %v50_v11  ;;  %v49_v18 = vld [vmem:[#allocation4 + $0x20] sm:$0xff]  ;;  %v51_v19 = vld [vmem:[#allocation4 + $0x30] sm:$0xff] }
  0x2a   :  { %608 = vmatpush1.bf16.msra.mxu1 %v607_v8  ;;  %v737_v17 = vpack.c.bf16 %v180_v15, %v178_v14  ;;  %v177_v20 = vld [vmem:[#allocation4 + $0x420] sm:$0xff]  ;;  %v611_v21 = vpack.c.bf16 %v51_v19, %v49_v18  ;;  %v179_v22 = vld [vmem:[#allocation4 + $0x430] sm:$0xff]  ;;  %v54_v23 = vld [vmem:[#allocation4 + $0x48] sm:$0xff] }
  0x2b   :  { %736 = vmatpush1.bf16.msra.mxu0 %v735_v12  ;;  %v56_v24 = vld [vmem:[#allocation4 + $0x58] sm:$0xff]  ;;  %610 = vmatprep.subr.bf16.mxu1 %v609_v16  ;;  %v739_v25 = vpack.c.bf16 %v179_v22, %v177_v20  ;;  %v182_v27 = vld [vmem:[#allocation4 + $0x448] sm:$0xff]  ;;  %v53_v29 = vld [vmem:[#allocation4 + $0x40] sm:$0xff] }
  0x2c   :  { %738 = vmatprep.subr.bf16.mxu0 %v737_v17  ;;  %v613_v26 = vpack.c.bf16 %v56_v24, %v54_v23  ;;  %v184_v28 = vld [vmem:[#allocation4 + $0x458] sm:$0xff]  ;;  %v55_v31 = vld [vmem:[#allocation4 + $0x50] sm:$0xff]  ;;  %v181_v32 = vld [vmem:[#allocation4 + $0x440] sm:$0xff] }
  0x2d   :  { %v741_v30 = vpack.c.bf16 %v184_v28, %v182_v27  ;;  %v183_v33 = vld [vmem:[#allocation4 + $0x450] sm:$0xff]  ;;  %v615_v34 = vpack.c.bf16 %v55_v31, %v53_v29  ;;  %v58_v35 = vld [vmem:[#allocation4 + $0x68] sm:$0xff]  ;;  %v60_v36 = vld [vmem:[#allocation4 + $0x78] sm:$0xff] }
  0x2e   :  { %612 = vmatpush1.bf16.msra.mxu1 %v611_v21  ;;  %v186_v37 = vld [vmem:[#allocation4 + $0x468] sm:$0xff]  ;;  %v743_v38 = vpack.c.bf16 %v183_v33, %v181_v32  ;;  %v617_v39 = vpack.c.bf16 %v60_v36, %v58_v35  ;;  %v188_v40 = vld [vmem:[#allocation4 + $0x478] sm:$0xff]  ;;  %v57_v41 = vld [vmem:[#allocation4 + $0x60] sm:$0xff] }
  0x2f   :  { %740 = vmatpush1.bf16.msra.mxu0 %v739_v25  ;;  %614 = vmatprep.subr.bf16.mxu1 %v613_v26  ;;  %v59_v42 = vld [vmem:[#allocation4 + $0x70] sm:$0xff]  ;;  %v745_v43 = vpack.c.bf16 %v188_v40, %v186_v37  ;;  %v185_v44 = vld [vmem:[#allocation4 + $0x460] sm:$0xff]  ;;  %v62_v46 = vld [vmem:[#allocation4 + $0x88] sm:$0xff] }
  0x30   :  { %742 = vmatprep.subr.bf16.mxu0 %v741_v30  ;;  %v187_v45 = vld [vmem:[#allocation4 + $0x470] sm:$0xff]  ;;  %v64_v47 = vld [vmem:[#allocation4 + $0x98] sm:$0xff]  ;;  %v190_v48 = vld [vmem:[#allocation4 + $0x488] sm:$0xff]  ;;  %v619_v50 = vpack.c.bf16 %v59_v42, %v57_v41 }
  0x31   :  { %v192_v49 = vld [vmem:[#allocation4 + $0x498] sm:$0xff]  ;;  %v747_v51 = vpack.c.bf16 %v187_v45, %v185_v44  ;;  %v621_v52 = vpack.c.bf16 %v64_v47, %v62_v46  ;;  %v61_v53 = vld [vmem:[#allocation4 + $0x80] sm:$0xff]  ;;  %v63_v54 = vld [vmem:[#allocation4 + $0x90] sm:$0xff] }
  0x32   :  { %616 = vmatpush1.bf16.msra.mxu1 %v615_v34  ;;  %v189_v55 = vld [vmem:[#allocation4 + $0x480] sm:$0xff]  ;;  %v749_v56 = vpack.c.bf16 %v192_v49, %v190_v48  ;;  %v191_v57 = vld [vmem:[#allocation4 + $0x490] sm:$0xff]  ;;  %v66_v58 = vld [vmem:[#allocation4 + $0xa8] sm:$0xff]  ;;  %v623_v62 = vpack.c.bf16 %v63_v54, %v61_v53 }
  0x33   :  { %744 = vmatpush1.bf16.msra.mxu0 %v743_v38  ;;  %618 = vmatprep.subr.bf16.mxu1 %v617_v39  ;;  %v68_v59 = vld [vmem:[#allocation4 + $0xb8] sm:$0xff]  ;;  %v194_v60 = vld [vmem:[#allocation4 + $0x4a8] sm:$0xff]  ;;  %v751_v63 = vpack.c.bf16 %v191_v57, %v189_v55  ;;  %v65_v1 = vld [vmem:[#allocation4 + $0xa0] sm:$0xff] }
  0x34   :  { %746 = vmatprep.subr.bf16.mxu0 %v745_v43  ;;  %v196_v61 = vld [vmem:[#allocation4 + $0x4b8] sm:$0xff]  ;;  %v625_v0 = vpack.c.bf16 %v68_v59, %v66_v58  ;;  %v67_v2 = vld [vmem:[#allocation4 + $0xb0] sm:$0xff]  ;;  %v193_v3 = vld [vmem:[#allocation4 + $0x4a0] sm:$0xff] }
  0x35   :  { %v753_v4 = vpack.c.bf16 %v196_v61, %v194_v60  ;;  %v195_v5 = vld [vmem:[#allocation4 + $0x4b0] sm:$0xff]  ;;  %v70_v6 = vld [vmem:[#allocation4 + $0xc8] sm:$0xff]  ;;  %v72_v7 = vld [vmem:[#allocation4 + $0xd8] sm:$0xff]  ;;  %v627_v10 = vpack.c.bf16 %v67_v2, %v65_v1 }
  0x36   :  { %620 = vmatpush1.bf16.msra.mxu1 %v619_v50  ;;  %v198_v8 = vld [vmem:[#allocation4 + $0x4c8] sm:$0xff]  ;;  %v200_v9 = vld [vmem:[#allocation4 + $0x4d8] sm:$0xff]  ;;  %v755_v11 = vpack.c.bf16 %v195_v5, %v193_v3  ;;  %v629_v12 = vpack.c.bf16 %v72_v7, %v70_v6  ;;  %v69_v13 = vld [vmem:[#allocation4 + $0xc0] sm:$0xff] }
  0x37   :  { %748 = vmatpush1.bf16.msra.mxu0 %v747_v51  ;;  %622 = vmatprep.subr.bf16.mxu1 %v621_v52  ;;  %v71_v14 = vld [vmem:[#allocation4 + $0xd0] sm:$0xff]  ;;  %v197_v15 = vld [vmem:[#allocation4 + $0x4c0] sm:$0xff]  ;;  %v757_v16 = vpack.c.bf16 %v200_v9, %v198_v8  ;;  %v74_v18 = vld [vmem:[#allocation4 + $0xe8] sm:$0xff] }
  0x38   :  { %750 = vmatprep.subr.bf16.mxu0 %v749_v56  ;;  %v199_v17 = vld [vmem:[#allocation4 + $0x4d0] sm:$0xff]  ;;  %v76_v19 = vld [vmem:[#allocation4 + $0xf8] sm:$0xff]  ;;  %v202_v20 = vld [vmem:[#allocation4 + $0x4e8] sm:$0xff]  ;;  %v631_v22 = vpack.c.bf16 %v71_v14, %v69_v13 }
  0x39   :  { %v204_v21 = vld [vmem:[#allocation4 + $0x4f8] sm:$0xff]  ;;  %v759_v23 = vpack.c.bf16 %v199_v17, %v197_v15  ;;  %v633_v24 = vpack.c.bf16 %v76_v19, %v74_v18  ;;  %v73_v25 = vld [vmem:[#allocation4 + $0xe0] sm:$0xff]  ;;  %v75_v26 = vld [vmem:[#allocation4 + $0xf0] sm:$0xff] }
  0x3a   :  { %624 = vmatpush1.bf16.msra.mxu1 %v623_v62  ;;  %v201_v27 = vld [vmem:[#allocation4 + $0x4e0] sm:$0xff]  ;;  %v761_v28 = vpack.c.bf16 %v204_v21, %v202_v20  ;;  %v203_v29 = vld [vmem:[#allocation4 + $0x4f0] sm:$0xff]  ;;  %v78_v30 = vld [vmem:[#allocation4 + $0x108] sm:$0xff]  ;;  %v635_v34 = vpack.c.bf16 %v75_v26, %v73_v25 }
  0x3b   :  { %752 = vmatpush1.bf16.msra.mxu0 %v751_v63  ;;  %626 = vmatprep.subr.bf16.mxu1 %v625_v0  ;;  %v80_v31 = vld [vmem:[#allocation4 + $0x118] sm:$0xff]  ;;  %v206_v32 = vld [vmem:[#allocation4 + $0x508] sm:$0xff]  ;;  %v763_v35 = vpack.c.bf16 %v203_v29, %v201_v27  ;;  %v77_v37 = vld [vmem:[#allocation4 + $0x100] sm:$0xff] }
  0x3c   :  { %754 = vmatprep.subr.bf16.mxu0 %v753_v4  ;;  %v208_v33 = vld [vmem:[#allocation4 + $0x518] sm:$0xff]  ;;  %v637_v36 = vpack.c.bf16 %v80_v31, %v78_v30  ;;  %v79_v38 = vld [vmem:[#allocation4 + $0x110] sm:$0xff]  ;;  %v205_v39 = vld [vmem:[#allocation4 + $0x500] sm:$0xff] }
  0x3d   :  { %v765_v40 = vpack.c.bf16 %v208_v33, %v206_v32  ;;  %v207_v41 = vld [vmem:[#allocation4 + $0x510] sm:$0xff]  ;;  %v82_v42 = vld [vmem:[#allocation4 + $0x128] sm:$0xff]  ;;  %v84_v43 = vld [vmem:[#allocation4 + $0x138] sm:$0xff]  ;;  %v639_v46 = vpack.c.bf16 %v79_v38, %v77_v37 }
  0x3e   :  { %628 = vmatpush1.bf16.msra.mxu1 %v627_v10  ;;  %v210_v44 = vld [vmem:[#allocation4 + $0x528] sm:$0xff]  ;;  %v212_v45 = vld [vmem:[#allocation4 + $0x538] sm:$0xff]  ;;  %v767_v47 = vpack.c.bf16 %v207_v41, %v205_v39  ;;  %v641_v48 = vpack.c.bf16 %v84_v43, %v82_v42  ;;  %v81_v49 = vld [vmem:[#allocation4 + $0x120] sm:$0xff] }
  0x3f   :  { %756 = vmatpush1.bf16.msra.mxu0 %v755_v11  ;;  %630 = vmatprep.subr.bf16.mxu1 %v629_v12  ;;  %v83_v50 = vld [vmem:[#allocation4 + $0x130] sm:$0xff]  ;;  %v209_v51 = vld [vmem:[#allocation4 + $0x520] sm:$0xff]  ;;  %v769_v52 = vpack.c.bf16 %v212_v45, %v210_v44  ;;  %v86_v54 = vld [vmem:[#allocation4 + $0x148] sm:$0xff] }
  0x40   :  { %758 = vmatprep.subr.bf16.mxu0 %v757_v16  ;;  %v211_v53 = vld [vmem:[#allocation4 + $0x530] sm:$0xff]  ;;  %v88_v55 = vld [vmem:[#allocation4 + $0x158] sm:$0xff]  ;;  %v214_v56 = vld [vmem:[#allocation4 + $0x548] sm:$0xff]  ;;  %v643_v58 = vpack.c.bf16 %v83_v50, %v81_v49 }
  0x41   :  { %v216_v57 = vld [vmem:[#allocation4 + $0x558] sm:$0xff]  ;;  %v771_v59 = vpack.c.bf16 %v211_v53, %v209_v51  ;;  %v645_v60 = vpack.c.bf16 %v88_v55, %v86_v54  ;;  %v85_v61 = vld [vmem:[#allocation4 + $0x140] sm:$0xff]  ;;  %v87_v62 = vld [vmem:[#allocation4 + $0x150] sm:$0xff] }
  0x42   :  { %632 = vmatpush1.bf16.msra.mxu1 %v631_v22  ;;  %v213_v63 = vld [vmem:[#allocation4 + $0x540] sm:$0xff]  ;;  %v773_v0 = vpack.c.bf16 %v216_v57, %v214_v56  ;;  %v215_v1 = vld [vmem:[#allocation4 + $0x550] sm:$0xff]  ;;  %v90_v2 = vld [vmem:[#allocation4 + $0x168] sm:$0xff]  ;;  %v647_v6 = vpack.c.bf16 %v87_v62, %v85_v61 }
  0x43   :  { %760 = vmatpush1.bf16.msra.mxu0 %v759_v23  ;;  %634 = vmatprep.subr.bf16.mxu1 %v633_v24  ;;  %v92_v3 = vld [vmem:[#allocation4 + $0x178] sm:$0xff]  ;;  %v218_v4 = vld [vmem:[#allocation4 + $0x568] sm:$0xff]  ;;  %v89_v7 = vld [vmem:[#allocation4 + $0x160] sm:$0xff]  ;;  %v775_v8 = vpack.c.bf16 %v215_v1, %v213_v63 }
  0x44   :  { %762 = vmatprep.subr.bf16.mxu0 %v761_v28  ;;  %v220_v5 = vld [vmem:[#allocation4 + $0x578] sm:$0xff]  ;;  %v649_v9 = vpack.c.bf16 %v92_v3, %v90_v2  ;;  %v91_v10 = vld [vmem:[#allocation4 + $0x170] sm:$0xff]  ;;  %v217_v11 = vld [vmem:[#allocation4 + $0x560] sm:$0xff] }
  0x45   :  { %v219_v12 = vld [vmem:[#allocation4 + $0x570] sm:$0xff]  ;;  %v777_v13 = vpack.c.bf16 %v220_v5, %v218_v4  ;;  %v94_v14 = vld [vmem:[#allocation4 + $0x188] sm:$0xff]  ;;  %v96_v15 = vld [vmem:[#allocation4 + $0x198] sm:$0xff]  ;;  %v651_v20 = vpack.c.bf16 %v91_v10, %v89_v7 }
  0x46   :  { %636 = vmatpush1.bf16.msra.mxu1 %v635_v34  ;;  %v38_v16 = vld [vmem:[#allocation2 + $0x8] sm:$0xff]  ;;  %v224_v18 = vld [vmem:[#allocation4 + $0x598] sm:$0xff]  ;;  %v779_v21 = vpack.c.bf16 %v219_v12, %v217_v11  ;;  %v653_v22 = vpack.c.bf16 %v96_v15, %v94_v14  ;;  %v93_v23 = vld [vmem:[#allocation4 + $0x180] sm:$0xff] }
  0x47   :  { %764 = vmatpush1.bf16.msra.mxu0 %v763_v35  ;;  %638 = vmatprep.subr.bf16.mxu1 %v637_v36  ;;  %v222_v17 = vld [vmem:[#allocation4 + $0x588] sm:$0xff]  ;;  %v95_v24 = vld [vmem:[#allocation4 + $0x190] sm:$0xff]  ;;  %v221_v25 = vld [vmem:[#allocation4 + $0x580] sm:$0xff] }
  0x48   :  { %766 = vmatprep.subr.bf16.mxu0 %v765_v40  ;;  %365 = vmatprep.mubr.f32.mxu1 %v38_v16  ;;  %v42_v19 = vld [vmem:[#allocation2 + $0x28] sm:$0xff]  ;;  %v781_v26 = vpack.c.bf16 %v224_v18, %v222_v17  ;;  %v223_v27 = vld [vmem:[#allocation4 + $0x590] sm:$0xff]  ;;  %v100_v29 = vld [vmem:[#allocation4 + $0x1b8] sm:$0xff]  ;;  %v655_v32 = vpack.c.bf16 %v95_v24, %v93_v23 }
  0x49   :  { %507 = vmatprep.mubr.f32.mxu0 %v42_v19  ;;  %v98_v28 = vld [vmem:[#allocation4 + $0x1a8] sm:$0xff]  ;;  %v228_v31 = vld [vmem:[#allocation4 + $0x5b8] sm:$0xff]  ;;  %v783_v33 = vpack.c.bf16 %v223_v27, %v221_v25  ;;  %v97_v35 = vld [vmem:[#allocation4 + $0x1a0] sm:$0xff] }
  0x4a   :  { %640 = vmatpush1.bf16.msra.mxu1 %v639_v46  ;;  %v226_v30 = vld [vmem:[#allocation4 + $0x5a8] sm:$0xff]  ;;  %v657_v34 = vpack.c.bf16 %v100_v29, %v98_v28  ;;  %v99_v36 = vld [vmem:[#allocation4 + $0x1b0] sm:$0xff]  ;;  %v225_v37 = vld [vmem:[#allocation4 + $0x5a0] sm:$0xff] }
  0x4b   :  { %768 = vmatpush1.bf16.msra.mxu0 %v767_v47  ;;  %642 = vmatprep.subr.bf16.mxu1 %v641_v48  ;;  %v785_v38 = vpack.c.bf16 %v228_v31, %v226_v30  ;;  %v227_v39 = vld [vmem:[#allocation4 + $0x5b0] sm:$0xff]  ;;  %v102_v40 = vld [vmem:[#allocation4 + $0x1c8] sm:$0xff]  ;;  %v104_v41 = vld [vmem:[#allocation4 + $0x1d8] sm:$0xff]  ;;  %v659_v44 = vpack.c.bf16 %v99_v36, %v97_v35 }
  0x4c   :  { %770 = vmatprep.subr.bf16.mxu0 %v769_v52  ;;  %v230_v42 = vld [vmem:[#allocation4 + $0x5c8] sm:$0xff]  ;;  %v232_v43 = vld [vmem:[#allocation4 + $0x5d8] sm:$0xff]  ;;  %v787_v45 = vpack.c.bf16 %v227_v39, %v225_v37  ;;  %v661_v46 = vpack.c.bf16 %v104_v41, %v102_v40  ;;  %v101_v47 = vld [vmem:[#allocation4 + $0x1c0] sm:$0xff] }
  0x4d   :  { %v103_v48 = vld [vmem:[#allocation4 + $0x1d0] sm:$0xff]  ;;  %v229_v49 = vld [vmem:[#allocation4 + $0x5c0] sm:$0xff]  ;;  %v789_v50 = vpack.c.bf16 %v232_v43, %v230_v42  ;;  %v106_v52 = vld [vmem:[#allocation4 + $0x1e8] sm:$0xff] }
  0x4e   :  { %644 = vmatpush1.bf16.msra.mxu1 %v643_v58  ;;  %v231_v51 = vld [vmem:[#allocation4 + $0x5d0] sm:$0xff]  ;;  %v108_v53 = vld [vmem:[#allocation4 + $0x1f8] sm:$0xff]  ;;  %v234_v54 = vld [vmem:[#allocation4 + $0x5e8] sm:$0xff]  ;;  %v663_v56 = vpack.c.bf16 %v103_v48, %v101_v47 }
  0x4f   :  { %772 = vmatpush1.bf16.msra.mxu0 %v771_v59  ;;  %646 = vmatprep.subr.bf16.mxu1 %v645_v60  ;;  %v236_v55 = vld [vmem:[#allocation4 + $0x5f8] sm:$0xff]  ;;  %v791_v57 = vpack.c.bf16 %v231_v51, %v229_v49  ;;  %v665_v58 = vpack.c.bf16 %v108_v53, %v106_v52  ;;  %v105_v59 = vld [vmem:[#allocation4 + $0x1e0] sm:$0xff]  ;;  %v107_v60 = vld [vmem:[#allocation4 + $0x1f0] sm:$0xff] }
  0x50   :  { %774 = vmatprep.subr.bf16.mxu0 %v773_v0  ;;  %v233_v61 = vld [vmem:[#allocation4 + $0x5e0] sm:$0xff]  ;;  %v793_v62 = vpack.c.bf16 %v236_v55, %v234_v54  ;;  %v235_v63 = vld [vmem:[#allocation4 + $0x5f0] sm:$0xff]  ;;  %v110_v0 = vld [vmem:[#allocation4 + $0x208] sm:$0xff]  ;;  %v667_v4 = vpack.c.bf16 %v107_v60, %v105_v59 }
  0x51   :  { %v112_v1 = vld [vmem:[#allocation4 + $0x218] sm:$0xff]  ;;  %v238_v2 = vld [vmem:[#allocation4 + $0x608] sm:$0xff]  ;;  %v795_v5 = vpack.c.bf16 %v235_v63, %v233_v61  ;;  %v109_v7 = vld [vmem:[#allocation4 + $0x200] sm:$0xff] }
  0x52   :  { %648 = vmatpush1.bf16.msra.mxu1 %v647_v6  ;;  %v240_v3 = vld [vmem:[#allocation4 + $0x618] sm:$0xff]  ;;  %v669_v6 = vpack.c.bf16 %v112_v1, %v110_v0  ;;  %v239_v11 = vld [vmem:[#allocation4 + $0x610] sm:$0xff]  ;;  %v114_v12 = vld [vmem:[#allocation4 + $0x228] sm:$0xff] }
  0x53   :  { %776 = vmatpush1.bf16.msra.mxu0 %v775_v8  ;;  %650 = vmatprep.subr.bf16.mxu1 %v649_v9  ;;  %v111_v8 = vld [vmem:[#allocation4 + $0x210] sm:$0xff]  ;;  %v237_v9 = vld [vmem:[#allocation4 + $0x600] sm:$0xff]  ;;  %v797_v10 = vpack.c.bf16 %v240_v3, %v238_v2  ;;  %v242_v14 = vld [vmem:[#allocation4 + $0x628] sm:$0xff] }
  0x54   :  { %778 = vmatprep.subr.bf16.mxu0 %v777_v13  ;;  %v116_v13 = vld [vmem:[#allocation4 + $0x238] sm:$0xff]  ;;  %v37_v16 = vld [vmem:[#allocation2] sm:$0xff]  ;;  %v671_v17 = vpack.c.bf16 %v111_v8, %v109_v7  ;;  %v799_v19 = vpack.c.bf16 %v239_v11, %v237_v9  ;;  %v243_v25 = vld [vmem:[#allocation4 + $0x630] sm:$0xff] }
  0x55   :  { %v244_v15 = vld [vmem:[#allocation4 + $0x638] sm:$0xff]  ;;  %v41_v18 = vld [vmem:[#allocation2 + $0x20] sm:$0xff]  ;;  %v246_v28 = vld [vmem:[#allocation4 + $0x648] sm:$0xff] }
  0x56   :  { %652 = vmatpush1.bf16.msra.mxu1 %v651_v20  ;;  %v673_v20 = vpack.c.bf16 %v116_v13, %v114_v12  ;;  %v241_v23 = vld [vmem:[#allocation4 + $0x620] sm:$0xff]  ;;  %v801_v24 = vpack.c.bf16 %v244_v15, %v242_v14  ;;  %v120_v27 = vld [vmem:[#allocation4 + $0x258] sm:$0xff]  ;;  %v247_v37 = vld [vmem:[#allocation4 + $0x650] sm:$0xff] }
  0x57   :  { %780 = vmatpush1.bf16.msra.mxu0 %v779_v21  ;;  %654 = vmatprep.subr.bf16.mxu1 %v653_v22  ;;  %v113_v21 = vld [vmem:[#allocation4 + $0x220] sm:$0xff]  ;;  %v115_v22 = vld [vmem:[#allocation4 + $0x230] sm:$0xff]  ;;  %v248_v29 = vld [vmem:[#allocation4 + $0x658] sm:$0xff]  ;;  %v803_v31 = vpack.c.bf16 %v243_v25, %v241_v23 }
  0x58   :  { %782 = vmatprep.subr.bf16.mxu0 %v781_v26  ;;  %v118_v26 = vld [vmem:[#allocation4 + $0x248] sm:$0xff]  ;;  %v675_v30 = vpack.c.bf16 %v115_v22, %v113_v21  ;;  %v245_v35 = vld [vmem:[#allocation4 + $0x640] sm:$0xff]  ;;  %v805_v36 = vpack.c.bf16 %v248_v29, %v246_v28  ;;  %v124_v39 = vld [vmem:[#allocation4 + $0x278] sm:$0xff] }
  0x59   :  { %v250_v40 = vld [vmem:[#allocation4 + $0x668] sm:$0xff]  ;;  %v252_v41 = vld [vmem:[#allocation4 + $0x678] sm:$0xff]  ;;  %v807_v43 = vpack.c.bf16 %v247_v37, %v245_v35  ;;  %v249_v47 = vld [vmem:[#allocation4 + $0x660] sm:$0xff] }
  0x5a   :  { %656 = vmatpush1.bf16.msra.mxu1 %v655_v32  ;;  %v677_v32 = vpack.c.bf16 %v120_v27, %v118_v26  ;;  %v809_v48 = vpack.c.bf16 %v252_v41, %v250_v40  ;;  %v251_v49 = vld [vmem:[#allocation4 + $0x670] sm:$0xff]  ;;  %v128_v51 = vld [vmem:[#allocation4 + $0x298] sm:$0xff]  ;;  %v254_v52 = vld [vmem:[#allocation4 + $0x688] sm:$0xff] }
  0x5b   :  { %784 = vmatpush1.bf16.msra.mxu0 %v783_v33  ;;  %658 = vmatprep.subr.bf16.mxu1 %v657_v34  ;;  %v117_v33 = vld [vmem:[#allocation4 + $0x240] sm:$0xff]  ;;  %v119_v34 = vld [vmem:[#allocation4 + $0x250] sm:$0xff]  ;;  %v256_v53 = vld [vmem:[#allocation4 + $0x698] sm:$0xff]  ;;  %v811_v55 = vpack.c.bf16 %v251_v49, %v249_v47 }
  0x5c   :  { %786 = vmatprep.subr.bf16.mxu0 %v785_v38  ;;  %v122_v38 = vld [vmem:[#allocation4 + $0x268] sm:$0xff]  ;;  %v679_v42 = vpack.c.bf16 %v119_v34, %v117_v33  ;;  %v253_v59 = vld [vmem:[#allocation4 + $0x680] sm:$0xff]  ;;  %v813_v60 = vpack.c.bf16 %v256_v53, %v254_v52  ;;  %v255_v61 = vld [vmem:[#allocation4 + $0x690] sm:$0xff] }
  0x5d   :  { %v132_v63 = vld [vmem:[#allocation4 + $0x2b8] sm:$0xff]  ;;  %v258_v0 = vld [vmem:[#allocation4 + $0x6a8] sm:$0xff]  ;;  %v815_v3 = vpack.c.bf16 %v255_v61, %v253_v59  ;;  %v257_v7 = vld [vmem:[#allocation4 + $0x6a0] sm:$0xff] }
  0x5e   :  { %660 = vmatpush1.bf16.msra.mxu1 %v659_v44  ;;  %v681_v44 = vpack.c.bf16 %v124_v39, %v122_v38  ;;  %v260_v1 = vld [vmem:[#allocation4 + $0x6b8] sm:$0xff]  ;;  %v259_v9 = vld [vmem:[#allocation4 + $0x6b0] sm:$0xff]  ;;  %v262_v12 = vld [vmem:[#allocation4 + $0x6c8] sm:$0xff] }
  0x5f   :  { %788 = vmatpush1.bf16.msra.mxu0 %v787_v45  ;;  %662 = vmatprep.subr.bf16.mxu1 %v661_v46  ;;  %v121_v45 = vld [vmem:[#allocation4 + $0x260] sm:$0xff]  ;;  %v123_v46 = vld [vmem:[#allocation4 + $0x270] sm:$0xff]  ;;  %v817_v8 = vpack.c.bf16 %v260_v1, %v258_v0  ;;  %v136_v11 = vld [vmem:[#allocation4 + $0x2d8] sm:$0xff] }
  0x60   :  { %790 = vmatprep.subr.bf16.mxu0 %v789_v50  ;;  %v126_v50 = vld [vmem:[#allocation4 + $0x288] sm:$0xff]  ;;  %v683_v54 = vpack.c.bf16 %v123_v46, %v121_v45  ;;  %v264_v13 = vld [vmem:[#allocation4 + $0x6d8] sm:$0xff]  ;;  %v133_v15 = vld [vmem:[#allocation4 + $0x2c0] sm:$0xff] }
  0x61   :  { %v821_v21 = vpack.c.bf16 %v264_v13, %v262_v12  ;;  %v138_v22 = vld [vmem:[#allocation4 + $0x2e8] sm:$0xff]  ;;  %v140_v23 = vld [vmem:[#allocation4 + $0x2f8] sm:$0xff]  ;;  %v265_v33 = vld [vmem:[#allocation4 + $0x6e0] sm:$0xff] }
  0x62   :  { %664 = vmatpush1.bf16.msra.mxu1 %v663_v56  ;;  %v685_v56 = vpack.c.bf16 %v128_v51, %v126_v50  ;;  %v266_v25 = vld [vmem:[#allocation4 + $0x6e8] sm:$0xff]  ;;  %v268_v26 = vld [vmem:[#allocation4 + $0x6f8] sm:$0xff]  ;;  %v267_v35 = vld [vmem:[#allocation4 + $0x6f0] sm:$0xff] }
  0x63   :  { %792 = vmatpush1.bf16.msra.mxu0 %v791_v57  ;;  %666 = vmatprep.subr.bf16.mxu1 %v665_v58  ;;  %v125_v57 = vld [vmem:[#allocation4 + $0x280] sm:$0xff]  ;;  %v127_v58 = vld [vmem:[#allocation4 + $0x290] sm:$0xff]  ;;  %v44_v27 = vld [vmem:[#allocation2 + $0x38] sm:$0xff]  ;;  %v825_v34 = vpack.c.bf16 %v268_v26, %v266_v25  ;;  %v827_v41 = vpack.c.bf16 %v267_v35, %v265_v33 }
  0x64   :  { %794 = vmatprep.subr.bf16.mxu0 %v793_v62  ;;  %v130_v62 = vld [vmem:[#allocation4 + $0x2a8] sm:$0xff]  ;;  %v687_v2 = vpack.c.bf16 %v127_v58, %v125_v57  ;;  %v144_v37 = vld [vmem:[#allocation4 + $0x318] sm:$0xff]  ;;  %v269_v45 = vld [vmem:[#allocation4 + $0x700] sm:$0xff] }
  0x65   :  { %v270_v38 = vld [vmem:[#allocation4 + $0x708] sm:$0xff]  ;;  %v272_v39 = vld [vmem:[#allocation4 + $0x718] sm:$0xff]  ;;  %v271_v47 = vld [vmem:[#allocation4 + $0x710] sm:$0xff] }
  0x66   :  { %668 = vmatpush1.bf16.msra.mxu1 %v667_v4  ;;  %v689_v4 = vpack.c.bf16 %v132_v63, %v130_v62  ;;  %v829_v46 = vpack.c.bf16 %v272_v39, %v270_v38  ;;  %v148_v49 = vld [vmem:[#allocation4 + $0x338] sm:$0xff]  ;;  %v274_v50 = vld [vmem:[#allocation4 + $0x728] sm:$0xff]  ;;  %v831_v53 = vpack.c.bf16 %v271_v47, %v269_v45  ;;  %v273_v57 = vld [vmem:[#allocation4 + $0x720] sm:$0xff] }
  0x67   :  { %796 = vmatpush1.bf16.msra.mxu0 %v795_v5  ;;  %670 = vmatprep.subr.bf16.mxu1 %v669_v6  ;;  %v129_v5 = vld [vmem:[#allocation4 + $0x2a0] sm:$0xff]  ;;  %v131_v6 = vld [vmem:[#allocation4 + $0x2b0] sm:$0xff]  ;;  %v276_v51 = vld [vmem:[#allocation4 + $0x738] sm:$0xff] }
  0x68   :  { %798 = vmatprep.subr.bf16.mxu0 %v797_v10  ;;  %v134_v10 = vld [vmem:[#allocation4 + $0x2c8] sm:$0xff]  ;;  %v691_v14 = vpack.c.bf16 %v131_v6, %v129_v5  ;;  %v833_v58 = vpack.c.bf16 %v276_v51, %v274_v50  ;;  %v275_v59 = vld [vmem:[#allocation4 + $0x730] sm:$0xff]  ;;  %v152_v61 = vld [vmem:[#allocation4 + $0x358] sm:$0xff] }
  0x69   :  { %366 = vmatmul.mubr.f32.vlgmr.msra.gmra.mrb[0].mxu1 %v37_v16  ;;  %v819_v16 = vpack.c.bf16 %v259_v9, %v257_v7  ;;  %v278_v62 = vld [vmem:[#allocation4 + $0x748] sm:$0xff]  ;;  %v280_v63 = vld [vmem:[#allocation4 + $0x758] sm:$0xff]  ;;  %v835_v1 = vpack.c.bf16 %v275_v59, %v273_v57  ;;  %v277_v5 = vld [vmem:[#allocation4 + $0x740] sm:$0xff] }
  0x6a   :  { %672 = vmatpush1.bf16.msra.mxu1 %v671_v17  ;;  %508 = vmatmul.mubr.f32.vlgmr.msra.gmra.mrb[0].mxu0 %v41_v18  ;;  %v693_v17 = vpack.c.bf16 %v136_v11, %v134_v10  ;;  %v135_v18 = vld [vmem:[#allocation4 + $0x2d0] sm:$0xff]  ;;  %v837_v6 = vpack.c.bf16 %v280_v63, %v278_v62  ;;  %v156_v9 = vld [vmem:[#allocation4 + $0x378] sm:$0xff]  ;;  %v282_v10 = vld [vmem:[#allocation4 + $0x768] sm:$0xff] }
  0x6b   :  { %800 = vmatpush1.bf16.msra.mxu0 %v799_v19  ;;  %674 = vmatprep.subr.bf16.mxu1 %v673_v20  ;;  %v261_v19 = vld [vmem:[#allocation4 + $0x6c0] sm:$0xff]  ;;  %v263_v20 = vld [vmem:[#allocation4 + $0x6d0] sm:$0xff]  ;;  %v695_v28 = vpack.c.bf16 %v135_v18, %v133_v15  ;;  %v284_v11 = vld [vmem:[#allocation4 + $0x778] sm:$0xff] }
  0x6c   :  { %802 = vmatprep.subr.bf16.mxu0 %v801_v24  ;;  %v40_v24 = vld [vmem:[#allocation2 + $0x18] sm:$0xff]  ;;  %578 = vmatprep.mubr.f32.mxu0 %v44_v27  ;;  %v823_v29 = vpack.c.bf16 %v263_v20, %v261_v19  ;;  %v279_v7 = vld [vmem:[#allocation4 + $0x750] sm:$0xff]  ;;  %v153_v15 = vld [vmem:[#allocation4 + $0x360] sm:$0xff]  ;;  %v841_v18 = vpack.c.bf16 %v284_v11, %v282_v10 }
  0x6d   :  { %436 = vmatprep.mubr.f32.mxu1 %v40_v24  ;;  %v839_v13 = vpack.c.bf16 %v279_v7, %v277_v5  ;;  %v283_v19 = vld [vmem:[#allocation4 + $0x770] sm:$0xff]  ;;  %v158_v20 = vld [vmem:[#allocation4 + $0x388] sm:$0xff]  ;;  %v157_v27 = vld [vmem:[#allocation4 + $0x380] sm:$0xff] }
  0x6e   :  { %676 = vmatpush1.bf16.msra.mxu1 %v675_v30  ;;  %v697_v30 = vpack.c.bf16 %v140_v23, %v138_v22  ;;  %v286_v22 = vld [vmem:[#allocation4 + $0x788] sm:$0xff]  ;;  %v288_v23 = vld [vmem:[#allocation4 + $0x798] sm:$0xff]  ;;  %v161_v39 = vld [vmem:[#allocation4 + $0x3a0] sm:$0xff] }
  0x6f   :  { %804 = vmatpush1.bf16.msra.mxu0 %v803_v31  ;;  %678 = vmatprep.subr.bf16.mxu1 %v677_v32  ;;  %v137_v31 = vld [vmem:[#allocation4 + $0x2e0] sm:$0xff]  ;;  %v139_v32 = vld [vmem:[#allocation4 + $0x2f0] sm:$0xff]  ;;  %v164_v33 = vld [vmem:[#allocation4 + $0x3b8] sm:$0xff] }
  0x70   :  { %806 = vmatprep.subr.bf16.mxu0 %v805_v36  ;;  %v142_v36 = vld [vmem:[#allocation4 + $0x308] sm:$0xff]  ;;  %v699_v40 = vpack.c.bf16 %v139_v32, %v137_v31  ;;  %v287_v31 = vld [vmem:[#allocation4 + $0x790] sm:$0xff]  ;;  %v292_v35 = vld [vmem:[#allocation4 + $0x7b8] sm:$0xff] }
  0x71   :  { %v162_v32 = vld [vmem:[#allocation4 + $0x3a8] sm:$0xff]  ;;  %v168_v45 = vld [vmem:[#allocation4 + $0x3d8] sm:$0xff]  ;;  %v165_v51 = vld [vmem:[#allocation4 + $0x3c0] sm:$0xff] }
  0x72   :  { %680 = vmatpush1.bf16.msra.mxu1 %v679_v42  ;;  %v701_v42 = vpack.c.bf16 %v144_v37, %v142_v36  ;;  %v721_v38 = vpack.c.bf16 %v164_v33, %v162_v32  ;;  %v296_v47 = vld [vmem:[#allocation4 + $0x7d8] sm:$0xff]  ;;  %v169_v63 = vld [vmem:[#allocation4 + $0x3e0] sm:$0xff]  ;;  %v43_v7 = vld [vmem:[#allocation2 + $0x30] sm:$0xff] }
  0x73   :  { %808 = vmatpush1.bf16.msra.mxu0 %v807_v43  ;;  %682 = vmatprep.subr.bf16.mxu1 %v681_v44  ;;  %v141_v43 = vld [vmem:[#allocation4 + $0x300] sm:$0xff]  ;;  %v143_v44 = vld [vmem:[#allocation4 + $0x310] sm:$0xff]  ;;  %v172_v57 = vld [vmem:[#allocation4 + $0x3f8] sm:$0xff] }
  0x74   :  { %810 = vmatprep.subr.bf16.mxu0 %v809_v48  ;;  %v146_v48 = vld [vmem:[#allocation4 + $0x328] sm:$0xff]  ;;  %v703_v52 = vpack.c.bf16 %v143_v44, %v141_v43  ;;  %v291_v43 = vld [vmem:[#allocation4 + $0x7b0] sm:$0xff]  ;;  %v300_v59 = vld [vmem:[#allocation4 + $0x7f8] sm:$0xff] }
  0x75   :  { %v166_v44 = vld [vmem:[#allocation4 + $0x3c8] sm:$0xff] }
  0x76   :  { %684 = vmatpush1.bf16.msra.mxu1 %v683_v54  ;;  %v705_v54 = vpack.c.bf16 %v148_v49, %v146_v48  ;;  %v725_v50 = vpack.c.bf16 %v168_v45, %v166_v44 }
  0x77   :  { %812 = vmatpush1.bf16.msra.mxu0 %v811_v55  ;;  %686 = vmatprep.subr.bf16.mxu1 %v685_v56  ;;  %v145_v55 = vld [vmem:[#allocation4 + $0x320] sm:$0xff]  ;;  %v147_v56 = vld [vmem:[#allocation4 + $0x330] sm:$0xff] }
  0x78   :  { %814 = vmatprep.subr.bf16.mxu0 %v813_v60  ;;  %v150_v60 = vld [vmem:[#allocation4 + $0x348] sm:$0xff]  ;;  %v707_v0 = vpack.c.bf16 %v147_v56, %v145_v55  ;;  %v295_v55 = vld [vmem:[#allocation4 + $0x7d0] sm:$0xff] }
  0x79   :  { %v170_v56 = vld [vmem:[#allocation4 + $0x3e8] sm:$0xff] }
  0x7a   :  { %688 = vmatpush1.bf16.msra.mxu1 %v687_v2  ;;  %v709_v2 = vpack.c.bf16 %v152_v61, %v150_v60  ;;  %v729_v62 = vpack.c.bf16 %v172_v57, %v170_v56 }
  0x7b   :  { %816 = vmatpush1.bf16.msra.mxu0 %v815_v3  ;;  %690 = vmatprep.subr.bf16.mxu1 %v689_v4  ;;  %v149_v3 = vld [vmem:[#allocation4 + $0x340] sm:$0xff]  ;;  %v151_v4 = vld [vmem:[#allocation4 + $0x350] sm:$0xff] }
  0x7c   :  { %818 = vmatprep.subr.bf16.mxu0 %v817_v8  ;;  %v154_v8 = vld [vmem:[#allocation4 + $0x368] sm:$0xff]  ;;  %v711_v12 = vpack.c.bf16 %v151_v4, %v149_v3  ;;  %v299_v3 = vld [vmem:[#allocation4 + $0x7f0] sm:$0xff] }
  0x7e   :  { %692 = vmatpush1.bf16.msra.mxu1 %v691_v14  ;;  %v713_v14 = vpack.c.bf16 %v156_v9, %v154_v8 }
  0x7f   :  { %820 = vmatpush1.bf16.msra.mxu0 %v819_v16  ;;  %694 = vmatprep.subr.bf16.mxu1 %v693_v17  ;;  %v155_v16 = vld [vmem:[#allocation4 + $0x370] sm:$0xff]  ;;  %v281_v17 = vld [vmem:[#allocation4 + $0x760] sm:$0xff] }
  0x80   :  { %822 = vmatprep.subr.bf16.mxu0 %v821_v21  ;;  %v160_v21 = vld [vmem:[#allocation4 + $0x398] sm:$0xff]  ;;  %v715_v24 = vpack.c.bf16 %v155_v16, %v153_v15  ;;  %v843_v25 = vpack.c.bf16 %v283_v19, %v281_v17 }
  0x81   :  { %v717_v26 = vpack.c.bf16 %v160_v21, %v158_v20 }
  0x82   :  { %696 = vmatpush1.bf16.msra.mxu1 %v695_v28  ;;  %v159_v28 = vld [vmem:[#allocation4 + $0x390] sm:$0xff] }
  0x83   :  { %824 = vmatpush1.bf16.msra.mxu0 %v823_v29  ;;  %698 = vmatprep.subr.bf16.mxu1 %v697_v30  ;;  %v285_v29 = vld [vmem:[#allocation4 + $0x780] sm:$0xff]  ;;  %v845_v30 = vpack.c.bf16 %v288_v23, %v286_v22  ;;  %v719_v36 = vpack.c.bf16 %v159_v28, %v157_v27 }
  0x84   :  { %826 = vmatprep.subr.bf16.mxu0 %v825_v34  ;;  %v290_v34 = vld [vmem:[#allocation4 + $0x7a8] sm:$0xff]  ;;  %v847_v37 = vpack.c.bf16 %v287_v31, %v285_v29 }
  0x86   :  { %700 = vmatpush1.bf16.msra.mxu1 %v699_v40  ;;  %v163_v40 = vld [vmem:[#allocation4 + $0x3b0] sm:$0xff] }
  0x87   :  { %828 = vmatpush1.bf16.msra.mxu0 %v827_v41  ;;  %702 = vmatprep.subr.bf16.mxu1 %v701_v42  ;;  %v289_v41 = vld [vmem:[#allocation4 + $0x7a0] sm:$0xff]  ;;  %v849_v42 = vpack.c.bf16 %v292_v35, %v290_v34  ;;  %v723_v48 = vpack.c.bf16 %v163_v40, %v161_v39 }
  0x88   :  { %830 = vmatprep.subr.bf16.mxu0 %v829_v46  ;;  %v294_v46 = vld [vmem:[#allocation4 + $0x7c8] sm:$0xff]  ;;  %v851_v49 = vpack.c.bf16 %v291_v43, %v289_v41 }
  0x8a   :  { %704 = vmatpush1.bf16.msra.mxu1 %v703_v52  ;;  %v167_v52 = vld [vmem:[#allocation4 + $0x3d0] sm:$0xff] }
  0x8b   :  { %832 = vmatpush1.bf16.msra.mxu0 %v831_v53  ;;  %706 = vmatprep.subr.bf16.mxu1 %v705_v54  ;;  %v293_v53 = vld [vmem:[#allocation4 + $0x7c0] sm:$0xff]  ;;  %v853_v54 = vpack.c.bf16 %v296_v47, %v294_v46  ;;  %v727_v60 = vpack.c.bf16 %v167_v52, %v165_v51 }
  0x8c   :  { %834 = vmatprep.subr.bf16.mxu0 %v833_v58  ;;  %v298_v58 = vld [vmem:[#allocation4 + $0x7e8] sm:$0xff]  ;;  %v855_v61 = vpack.c.bf16 %v295_v55, %v293_v53 }
  0x8e   :  { %708 = vmatpush1.bf16.msra.mxu1 %v707_v0  ;;  %v171_v0 = vld [vmem:[#allocation4 + $0x3f0] sm:$0xff] }
  0x8f   :  { %836 = vmatpush1.bf16.msra.mxu0 %v835_v1  ;;  %710 = vmatprep.subr.bf16.mxu1 %v709_v2  ;;  %v857_v1 = vpack.c.bf16 %v300_v59, %v298_v58  ;;  %v297_v2 = vld [vmem:[#allocation4 + $0x7e0] sm:$0xff]  ;;  %v731_v4 = vpack.c.bf16 %v171_v0, %v169_v63 }
  0x90   :  { %838 = vmatprep.subr.bf16.mxu0 %v837_v6  ;;  %v859_v5 = vpack.c.bf16 %v299_v3, %v297_v2  ;;  %v39_v6 = vld [vmem:[#allocation2 + $0x10] sm:$0xff] }
  0x92   :  { %712 = vmatpush1.bf16.msra.mxu1 %v711_v12 }
  0x93   :  { %840 = vmatpush1.bf16.msra.mxu0 %v839_v13  ;;  %714 = vmatprep.subr.bf16.mxu1 %v713_v14 }
  0x94   :  { %842 = vmatprep.subr.bf16.mxu0 %v841_v18 }
  0x96   :  { %716 = vmatpush1.bf16.msra.mxu1 %v715_v24 }
  0x97   :  { %844 = vmatpush1.bf16.msra.mxu0 %v843_v25  ;;  %718 = vmatprep.subr.bf16.mxu1 %v717_v26 }
  0x98   :  { %846 = vmatprep.subr.bf16.mxu0 %v845_v30 }
  0x9a   :  { %720 = vmatpush1.bf16.msra.mxu1 %v719_v36 }
  0x9b   :  { %848 = vmatpush1.bf16.msra.mxu0 %v847_v37  ;;  %722 = vmatprep.subr.bf16.mxu1 %v721_v38 }
  0x9c   :  { %850 = vmatprep.subr.bf16.mxu0 %v849_v42 }
  0x9e   :  { %724 = vmatpush1.bf16.msra.mxu1 %v723_v48 }
  0x9f   :  { %852 = vmatpush1.bf16.msra.mxu0 %v851_v49  ;;  %726 = vmatprep.subr.bf16.mxu1 %v725_v50 }
  0xa0   :  { %854 = vmatprep.subr.bf16.mxu0 %v853_v54 }
  0xa2   :  { %728 = vmatpush1.bf16.msra.mxu1 %v727_v60 }
  0xa3   :  { %856 = vmatpush1.bf16.msra.mxu0 %v855_v61  ;;  %730 = vmatprep.subr.bf16.mxu1 %v729_v62 }
  0xa4   :  { %858 = vmatprep.subr.bf16.mxu0 %v857_v1 }
  0xa6   :  { %732 = vmatpush1.bf16.msra.mxu1 %v731_v4 }
  0xa7   :  { %860 = vmatpush1.bf16.msra.mxu0 %v859_v5 }
  0xa9   :  { %437 = vmatmul.mubr.f32.vlgmr.msra.gmra.mrb[0].mxu1 %v39_v6 }
  0xaa   :  { %579 = vmatmul.mubr.f32.vlgmr.msra.gmra.mrb[0].mxu0 %v43_v7 }
 0x17c   :  { %v438_v8 = vpop.f32.mrb[0].mxu1 }
 0x17d   :  { %v580_v9 = vpop.f32.mrb[0].mxu0  ;;  %v440_v10 = vpop.f32.mrb[1].mxu1 }
 0x17e   :  { %v861_v11 = vadd.f32 %v580_v9, %v438_v8  ;;  %v582_v12 = vpop.f32.mrb[1].mxu0 }
 0x17f   :  { %v862_v13 = vadd.f32 %v582_v12, %v440_v10 }
 0x180   :  { %v585_v14 = vmul.f32 %v861_v11, %v861_v11 }
 0x181   :  { %v586_v15 = vmul.f32 %v862_v13, %v862_v13 }
 0x183   :  { %v587_v16 = vadd.f32 %v586_v15, %v585_v14 }
 0x185   :  { %588 = vmax.xlane.f32.xlu0 %v587_v16 }
 0x212   :  { %v589_v17 = vpop.xlane.xlu0 %588 }
 0x213   :  { %871 = vrsqrt.f32 %v589_v17  ;;  %vm592_vm0 = vcmp.eq.f32.partialorder %v589_v17, inf  ;;  %v595_v20 = vand.u32 2147483648, %v589_v17  ;;  %vm594_vm2 = vcmp.eq.f32.partialorder %v589_v17, 0.0 }
 0x21d   :  { %v872_v18 = vpop.eup %871 }
 0x21e   :  { %v591_v19 = vmul.f32 %v872_v18, %v589_v17 }
 0x220   :  { %v593_v21 = vsel %vm592_vm0, %v589_v17, %v591_v19 }
 0x221   :  { %v596_v22 = vsel %vm594_vm2, %v595_v20, %v593_v21 }
 0x222   :  { %598 = vst.msk [vmem:[%s976_s2] sm:$0xff] %vm597_vm1, %v596_v22 }
 0x223   :  { %603 = vsyncpa [#allocation3], 1 }
 0x224   :  { %604 = vsyncpa [#allocation5], 1 }

</bundles_post_ra>
